<compile_context>
chip_gen: v7x
topology: tpu7x:2x2x1
jax: 0.10.0
libtpu: 0.0.40
codegen_flags: <defaults>
</compile_context>

<pallas_src>
import math

import jax
import jax.numpy as jnp
from jax.experimental import pallas as pl
from jax.experimental.pallas import tpu as pltpu
from jax.scipy.linalg import block_diag

LR_MUL = 0.01
LANE = 128
SUBLANE = 8


def _round_up(x, m):
    return (x + m - 1) // m * m


# ----------------------------------------------------------------------------
# Fused kernel: pixelnorm + unrolled chain of (matmul + bias [+ leaky]) layers
# ----------------------------------------------------------------------------
def make_fused_kernel(n_layers, acts, z_dim):
    """acts: tuple of bools (leaky relu per layer). z_dim: real (unpadded) z dim."""
    inv_zdim = 1.0 / float(z_dim)

    def kernel(*refs):
        # refs = (z_ref, w0, b0, w1, b1, ..., out_ref)
        z_ref = refs[0]
        out_ref = refs[-1]

        x = z_ref[...].astype(jnp.float32)                      # (TB, Zp)
        # PixelNorm over the REAL feature dim; padded lanes are zero so the
        # sum of squares is correct, we just divide by the true z_dim.
        ss = jnp.sum(x * x, axis=1, keepdims=True)
        x = x * jax.lax.rsqrt(ss * inv_zdim + 1e-8)

        for li in range(n_layers):
            w = refs[1 + 2 * li][...]                           # (in_p, out_p) pre-scaled
            b = refs[2 + 2 * li][...]                           # (1, out_p)    pre-scaled
            x = jnp.dot(x, w, preferred_element_type=jnp.float32) + b
            if acts[li]:
                x = jnp.where(x >= 0.0, x, 0.2 * x)             # LeakyReLU(0.2)

        out_ref[...] = x.astype(out_ref.dtype)

    return kernel


# ----------------------------------------------------------------------------
# Wrapper: single pallas_call, grid over (padded) batch
# ----------------------------------------------------------------------------
def multihead_mapping_forward(z, fused):
    """fused: output of prep_fused_params(). Returns dict name -> (B, head_dim)."""
    layers = fused["layers"]                 # list of (W_pad, b_pad, act)
    z_dim = fused["z_dim"]
    B, zd = z.shape
    zp = layers[0][0].shape[0]               # padded z width
    out_pad = layers[-1][0].shape[1]         # padded concatenated head width

    # Batch tiling: 256 rows per tile for large batches, else one 8-aligned tile.
    tile_b = 256 if B >= 256 else _round_up(max(B, 1), SUBLANE)
    b_pad = _round_up(B, tile_b)

    z_p = jnp.zeros((b_pad, zp), z.dtype).at[:B, :zd].set(z)

    n_layers = len(layers)
    acts = tuple(a for _, _, a in layers)
    kernel = make_fused_kernel(n_layers, acts, z_dim)

    in_specs = [pl.BlockSpec((tile_b, zp), lambda i: (i, 0))]
    args = [z_p]
    for w, b, _ in layers:
        # Whole (small) weight/bias resident in VMEM for every grid step.
        in_specs.append(pl.BlockSpec(w.shape, lambda i: (0, 0)))
        in_specs.append(pl.BlockSpec(b.shape, lambda i: (0, 0)))
        args.append(w)
        args.append(b)

    out = pl.pallas_call(
        kernel,
        out_shape=jax.ShapeDtypeStruct((b_pad, out_pad), z.dtype),
        grid=(b_pad // tile_b,),
        in_specs=in_specs,
        out_specs=pl.BlockSpec((tile_b, out_pad), lambda i: (i, 0)),
        compiler_params=pltpu.CompilerParams(
            dimension_semantics=("parallel",)),
    )(*args)

    out_dict = {}
    for name, (start, size) in fused["head_slices"].items():
        out_dict[name] = out[:B, start:start + size]
    return out_dict


# ----------------------------------------------------------------------------
# Parameter construction (mirrors EqualLinear.__init__) + one-time prep
# ----------------------------------------------------------------------------
def init_equal_linear(key, in_dim, out_dim, bias_init=0.0, lr_mul=LR_MUL):
    # torch.randn(out_dim, in_dim).div_(lr_mul); bias = zeros + bias_init
    w = jax.random.normal(key, (out_dim, in_dim), dtype=jnp.float32) / lr_mul
    b = jnp.full((out_dim,), bias_init, dtype=jnp.float32)
    return w, b


def build_params(key, z_dim, hidden_dim, base_layers, head_layers, head_dim_dict):
    params = {"base": [], "heads": {}}
    keys = jax.random.split(key, base_layers + head_layers * len(head_dim_dict))
    ki = 0
    for i in range(base_layers):
        in_dim = z_dim if i == 0 else hidden_dim
        act = i != base_layers - 1
        w, b = init_equal_linear(keys[ki], in_dim, hidden_dim)
        ki += 1
        params["base"].append((w, b, act))
    for name, head_dim in head_dim_dict.items():
        layers = []
        in_dim = hidden_dim
        for i in range(head_layers):
            if i == head_layers - 1:
                out_dim, act = head_dim, False
            else:
                out_dim, act = hidden_dim, True
            w, b = init_equal_linear(keys[ki], in_dim, out_dim)
            ki += 1
            layers.append((w, b, act))
            in_dim = out_dim
        params["heads"][name] = layers
    return params


def prep_fused_params(params, z_dim, head_layers, head_dim_dict, lr_mul=LR_MUL):
    """Fold scale/lr_mul, transpose to (in,out), fuse heads, pad to 128 lanes."""
    raw_layers = []  # (W (in,out) pre-scaled, b (out,) pre-scaled, act)

    # Base MLP layers.
    for w, b, act in params["base"]:
        scale = 1.0 / math.sqrt(w.shape[1]) * lr_mul
        raw_layers.append(((w * scale).T, b * lr_mul, act))

    # Head layers, fused per level.
    head_names = list(head_dim_dict.keys())
    for level in range(head_layers):
        ws, bs, acts = [], [], []
        for name in head_names:
            w, b, act = params["heads"][name][level]
            scale = 1.0 / math.sqrt(w.shape[1]) * lr_mul
            ws.append((w * scale).T)
            bs.append(b * lr_mul)
            acts.append(act)
        if level == 0:
            W = jnp.concatenate(ws, axis=1)   # shared input (base feature)
        else:
            W = block_diag(*ws)               # independent per-head paths
        raw_layers.append((W, jnp.concatenate(bs, axis=0), acts[0]))

    # Zero-pad so every activation / weight lane dim is a multiple of 128;
    # padded input width of layer i = padded output width of layer i-1.
    layers = []
    in_pad = _round_up(z_dim, LANE)
    for W, b, act in raw_layers:
        i_dim, o_dim = W.shape
        out_pad = _round_up(o_dim, LANE)
        Wp = jnp.zeros((in_pad, out_pad), jnp.float32).at[:i_dim, :o_dim].set(W)
        bp = jnp.zeros((1, out_pad), jnp.float32).at[0, :o_dim].set(b)
        layers.append((Wp, bp, act))
        in_pad = out_pad

    # Output slices of the concatenated final level, per head.
    head_slices = {}
    off = 0
    for name in head_names:
        hd = head_dim_dict[name]
        head_slices[name] = (off, hd)
        off += hd

    return {"layers": layers, "z_dim": z_dim, "head_slices": head_slices}


# ----------------------------------------------------------------------------
# Pure-JAX reference for verification (PyTorch semantics)
# ----------------------------------------------------------------------------
def reference_forward(z, params):
    h = z * jax.lax.rsqrt(jnp.mean(z * z, axis=1, keepdims=True) + 1e-8)

    def eql(x, w, b, act):
        scale = 1.0 / math.sqrt(w.shape[1]) * LR_MUL
        out = x @ (w * scale).T + b * LR_MUL
        if act:
            out = jnp.where(out >= 0.0, out, 0.2 * out)
        return out

    for w, b, act in params["base"]:
        h = eql(h, w, b, act)
    out = {}
    for name, layers in params["heads"].items():
        o = h
        for w, b, act in layers:
            o = eql(o, w, b, act)
        out[name] = o
    return out


if __name__ == "__main__":
    # Small shapes consistent with the module's forward (z: (batch, z_dim)).
    batch, z_dim, hidden_dim = 8, 32, 32
    base_layers, head_layers = 3, 2
    head_dim_dict = {"shape": 24, "app": 16}

    key = jax.random.PRNGKey(0)
    k_z, k_p = jax.random.split(key)
    z = jax.random.normal(k_z, (batch, z_dim), dtype=jnp.float32)
    params = build_params(k_p, z_dim, hidden_dim, base_layers, head_layers,
                          head_dim_dict)
    fused = prep_fused_params(params, z_dim, head_layers, head_dim_dict)

    out = multihead_mapping_forward(z, fused)
    out = jax.tree_util.tree_map(jax.block_until_ready, out)

    ref = reference_forward(z, params)
    for name in head_dim_dict:
        assert out[name].shape == (batch, head_dim_dict[name]), name
        assert jnp.allclose(out[name], ref[name], atol=1e-3, rtol=1e-3), name

    # TODO(synk): print_number_params / global_cfg.tl_debug verbose hooks are
    # logging-only side effects and are intentionally not reproduced.
    print("KERNEL_OK")
</pallas_src>

<mosaic_0001>
module attributes {stable_mosaic.version = 11 : i64} {
  func.func @kernel(%arg0: i32, %arg1: memref<8x128xf32, #tpu.memory_space<vmem>>, %arg2: memref<128x128xf32, #tpu.memory_space<vmem>>, %arg3: memref<1x128xf32, #tpu.memory_space<vmem>>, %arg4: memref<128x128xf32, #tpu.memory_space<vmem>>, %arg5: memref<1x128xf32, #tpu.memory_space<vmem>>, %arg6: memref<128x128xf32, #tpu.memory_space<vmem>>, %arg7: memref<1x128xf32, #tpu.memory_space<vmem>>, %arg8: memref<128x128xf32, #tpu.memory_space<vmem>>, %arg9: memref<1x128xf32, #tpu.memory_space<vmem>>, %arg10: memref<128x128xf32, #tpu.memory_space<vmem>>, %arg11: memref<1x128xf32, #tpu.memory_space<vmem>>, %arg12: memref<8x128xf32, #tpu.memory_space<vmem>>) attributes {dimension_semantics = [#tpu.dimension_semantics<parallel>], iteration_bounds = array<i64: 1>, scalar_prefetch = 0 : i64, scratch_operands = 0 : i64, tpu.core_type = #tpu.core_type<tc>, window_params = [{transform_indices = @transform_0, window_bounds = array<i64: 8, 128>}, {pipeline_mode = #tpu.pipeline_mode<synchronous>, transform_indices = @transform_1, window_bounds = array<i64: 128, 128>}, {pipeline_mode = #tpu.pipeline_mode<synchronous>, transform_indices = @transform_2, window_bounds = array<i64: 1, 128>}, {pipeline_mode = #tpu.pipeline_mode<synchronous>, transform_indices = @transform_3, window_bounds = array<i64: 128, 128>}, {pipeline_mode = #tpu.pipeline_mode<synchronous>, transform_indices = @transform_4, window_bounds = array<i64: 1, 128>}, {pipeline_mode = #tpu.pipeline_mode<synchronous>, transform_indices = @transform_5, window_bounds = array<i64: 128, 128>}, {pipeline_mode = #tpu.pipeline_mode<synchronous>, transform_indices = @transform_6, window_bounds = array<i64: 1, 128>}, {pipeline_mode = #tpu.pipeline_mode<synchronous>, transform_indices = @transform_7, window_bounds = array<i64: 128, 128>}, {pipeline_mode = #tpu.pipeline_mode<synchronous>, transform_indices = @transform_8, window_bounds = array<i64: 1, 128>}, {pipeline_mode = #tpu.pipeline_mode<synchronous>, transform_indices = @transform_9, window_bounds = array<i64: 128, 128>}, {pipeline_mode = #tpu.pipeline_mode<synchronous>, transform_indices = @transform_10, window_bounds = array<i64: 1, 128>}, {transform_indices = @transform_11, window_bounds = array<i64: 8, 128>}]} {
    %c0 = arith.constant 0 : index
    %c0_0 = arith.constant 0 : index
    %0 = vector.load %arg1[%c0, %c0_0] : memref<8x128xf32, #tpu.memory_space<vmem>>, vector<8x128xf32>
    %1 = arith.mulf %0, %0 : vector<8x128xf32>
    %cst = arith.constant dense<0.000000e+00> : vector<8xf32>
    %2 = vector.multi_reduction <add>, %1, %cst [1] : vector<8x128xf32> to vector<8xf32>
    %3 = vector.shape_cast %2 : vector<8xf32> to vector<8x1xf32>
    %cst_1 = arith.constant 3.125000e-02 : f32
    %4 = vector.broadcast %cst_1 : f32 to vector<8x1xf32>
    %5 = arith.mulf %3, %4 : vector<8x1xf32>
    %cst_2 = arith.constant 9.99999993E-9 : f32
    %6 = vector.broadcast %cst_2 : f32 to vector<8x1xf32>
    %7 = arith.addf %5, %6 : vector<8x1xf32>
    %8 = math.rsqrt %7 : vector<8x1xf32>
    %9 = vector.broadcast %8 : vector<8x1xf32> to vector<8x128xf32>
    %10 = arith.mulf %0, %9 : vector<8x128xf32>
    %c0_3 = arith.constant 0 : index
    %c0_4 = arith.constant 0 : index
    %11 = vector.load %arg2[%c0_3, %c0_4] : memref<128x128xf32, #tpu.memory_space<vmem>>, vector<128x128xf32>
    %c0_5 = arith.constant 0 : index
    %c0_6 = arith.constant 0 : index
    %12 = vector.load %arg3[%c0_5, %c0_6] : memref<1x128xf32, #tpu.memory_space<vmem>>, vector<1x128xf32>
    %cst_7 = arith.constant dense<0.000000e+00> : vector<8x128xf32>
    %13 = tpu.matmul %10, %11, %cst_7 {dimension_numbers = #tpu.dot_dimension_numbers<[1], [0], [0], [1], [0, 0, 1, 1], [], []>} : vector<8x128xf32>, vector<128x128xf32>, vector<8x128xf32> -> vector<8x128xf32>
    %14 = vector.broadcast %12 : vector<1x128xf32> to vector<8x128xf32>
    %15 = arith.addf %13, %14 : vector<8x128xf32>
    %cst_8 = arith.constant 0.000000e+00 : f32
    %16 = vector.broadcast %cst_8 : f32 to vector<8x128xf32>
    %17 = arith.cmpf oge, %15, %16 : vector<8x128xf32>
    %cst_9 = arith.constant 2.000000e-01 : f32
    %18 = vector.broadcast %cst_9 : f32 to vector<8x128xf32>
    %19 = arith.mulf %18, %15 : vector<8x128xf32>
    %20 = arith.select %17, %15, %19 : vector<8x128xi1>, vector<8x128xf32>
    %c0_10 = arith.constant 0 : index
    %c0_11 = arith.constant 0 : index
    %21 = vector.load %arg4[%c0_10, %c0_11] : memref<128x128xf32, #tpu.memory_space<vmem>>, vector<128x128xf32>
    %c0_12 = arith.constant 0 : index
    %c0_13 = arith.constant 0 : index
    %22 = vector.load %arg5[%c0_12, %c0_13] : memref<1x128xf32, #tpu.memory_space<vmem>>, vector<1x128xf32>
    %cst_14 = arith.constant dense<0.000000e+00> : vector<8x128xf32>
    %23 = tpu.matmul %20, %21, %cst_14 {dimension_numbers = #tpu.dot_dimension_numbers<[1], [0], [0], [1], [0, 0, 1, 1], [], []>} : vector<8x128xf32>, vector<128x128xf32>, vector<8x128xf32> -> vector<8x128xf32>
    %24 = vector.broadcast %22 : vector<1x128xf32> to vector<8x128xf32>
    %25 = arith.addf %23, %24 : vector<8x128xf32>
    %cst_15 = arith.constant 0.000000e+00 : f32
    %26 = vector.broadcast %cst_15 : f32 to vector<8x128xf32>
    %27 = arith.cmpf oge, %25, %26 : vector<8x128xf32>
    %cst_16 = arith.constant 2.000000e-01 : f32
    %28 = vector.broadcast %cst_16 : f32 to vector<8x128xf32>
    %29 = arith.mulf %28, %25 : vector<8x128xf32>
    %30 = arith.select %27, %25, %29 : vector<8x128xi1>, vector<8x128xf32>
    %c0_17 = arith.constant 0 : index
    %c0_18 = arith.constant 0 : index
    %31 = vector.load %arg6[%c0_17, %c0_18] : memref<128x128xf32, #tpu.memory_space<vmem>>, vector<128x128xf32>
    %c0_19 = arith.constant 0 : index
    %c0_20 = arith.constant 0 : index
    %32 = vector.load %arg7[%c0_19, %c0_20] : memref<1x128xf32, #tpu.memory_space<vmem>>, vector<1x128xf32>
    %cst_21 = arith.constant dense<0.000000e+00> : vector<8x128xf32>
    %33 = tpu.matmul %30, %31, %cst_21 {dimension_numbers = #tpu.dot_dimension_numbers<[1], [0], [0], [1], [0, 0, 1, 1], [], []>} : vector<8x128xf32>, vector<128x128xf32>, vector<8x128xf32> -> vector<8x128xf32>
    %34 = vector.broadcast %32 : vector<1x128xf32> to vector<8x128xf32>
    %35 = arith.addf %33, %34 : vector<8x128xf32>
    %c0_22 = arith.constant 0 : index
    %c0_23 = arith.constant 0 : index
    %36 = vector.load %arg8[%c0_22, %c0_23] : memref<128x128xf32, #tpu.memory_space<vmem>>, vector<128x128xf32>
    %c0_24 = arith.constant 0 : index
    %c0_25 = arith.constant 0 : index
    %37 = vector.load %arg9[%c0_24, %c0_25] : memref<1x128xf32, #tpu.memory_space<vmem>>, vector<1x128xf32>
    %cst_26 = arith.constant dense<0.000000e+00> : vector<8x128xf32>
    %38 = tpu.matmul %35, %36, %cst_26 {dimension_numbers = #tpu.dot_dimension_numbers<[1], [0], [0], [1], [0, 0, 1, 1], [], []>} : vector<8x128xf32>, vector<128x128xf32>, vector<8x128xf32> -> vector<8x128xf32>
    %39 = vector.broadcast %37 : vector<1x128xf32> to vector<8x128xf32>
    %40 = arith.addf %38, %39 : vector<8x128xf32>
    %cst_27 = arith.constant 0.000000e+00 : f32
    %41 = vector.broadcast %cst_27 : f32 to vector<8x128xf32>
    %42 = arith.cmpf oge, %40, %41 : vector<8x128xf32>
    %cst_28 = arith.constant 2.000000e-01 : f32
    %43 = vector.broadcast %cst_28 : f32 to vector<8x128xf32>
    %44 = arith.mulf %43, %40 : vector<8x128xf32>
    %45 = arith.select %42, %40, %44 : vector<8x128xi1>, vector<8x128xf32>
    %c0_29 = arith.constant 0 : index
    %c0_30 = arith.constant 0 : index
    %46 = vector.load %arg10[%c0_29, %c0_30] : memref<128x128xf32, #tpu.memory_space<vmem>>, vector<128x128xf32>
    %c0_31 = arith.constant 0 : index
    %c0_32 = arith.constant 0 : index
    %47 = vector.load %arg11[%c0_31, %c0_32] : memref<1x128xf32, #tpu.memory_space<vmem>>, vector<1x128xf32>
    %cst_33 = arith.constant dense<0.000000e+00> : vector<8x128xf32>
    %48 = tpu.matmul %45, %46, %cst_33 {dimension_numbers = #tpu.dot_dimension_numbers<[1], [0], [0], [1], [0, 0, 1, 1], [], []>} : vector<8x128xf32>, vector<128x128xf32>, vector<8x128xf32> -> vector<8x128xf32>
    %49 = vector.broadcast %47 : vector<1x128xf32> to vector<8x128xf32>
    %50 = arith.addf %48, %49 : vector<8x128xf32>
    %c0_34 = arith.constant 0 : index
    %c0_35 = arith.constant 0 : index
    %51 = vector.load %arg12[%c0_34, %c0_35] : memref<8x128xf32, #tpu.memory_space<vmem>>, vector<8x128xf32>
    tpu.vector_store %arg12[%c0_34, %c0_35], %50 {strides = array<i32>} : memref<8x128xf32, #tpu.memory_space<vmem>>, vector<8x128xf32>,
    return
  }
  func.func @transform_0(%arg0: i32) -> (i32, i32) {
    %c0_i32 = arith.constant 0 : i32
    %c0_i32_0 = arith.constant 0 : i32
    return %arg0, %c0_i32 : i32, i32
  }
  func.func @transform_1(%arg0: i32) -> (i32, i32) {
    %c0_i32 = arith.constant 0 : i32
    %c0_i32_0 = arith.constant 0 : i32
    %c0_i32_1 = arith.constant 0 : i32
    return %c0_i32, %c0_i32_0 : i32, i32
  }
  func.func @transform_2(%arg0: i32) -> (i32, i32) {
    %c0_i32 = arith.constant 0 : i32
    %c0_i32_0 = arith.constant 0 : i32
    %c0_i32_1 = arith.constant 0 : i32
    return %c0_i32, %c0_i32_0 : i32, i32
  }
  func.func @transform_3(%arg0: i32) -> (i32, i32) {
    %c0_i32 = arith.constant 0 : i32
    %c0_i32_0 = arith.constant 0 : i32
    %c0_i32_1 = arith.constant 0 : i32
    return %c0_i32, %c0_i32_0 : i32, i32
  }
  func.func @transform_4(%arg0: i32) -> (i32, i32) {
    %c0_i32 = arith.constant 0 : i32
    %c0_i32_0 = arith.constant 0 : i32
    %c0_i32_1 = arith.constant 0 : i32
    return %c0_i32, %c0_i32_0 : i32, i32
  }
  func.func @transform_5(%arg0: i32) -> (i32, i32) {
    %c0_i32 = arith.constant 0 : i32
    %c0_i32_0 = arith.constant 0 : i32
    %c0_i32_1 = arith.constant 0 : i32
    return %c0_i32, %c0_i32_0 : i32, i32
  }
  func.func @transform_6(%arg0: i32) -> (i32, i32) {
    %c0_i32 = arith.constant 0 : i32
    %c0_i32_0 = arith.constant 0 : i32
    %c0_i32_1 = arith.constant 0 : i32
    return %c0_i32, %c0_i32_0 : i32, i32
  }
  func.func @transform_7(%arg0: i32) -> (i32, i32) {
    %c0_i32 = arith.constant 0 : i32
    %c0_i32_0 = arith.constant 0 : i32
    %c0_i32_1 = arith.constant 0 : i32
    return %c0_i32, %c0_i32_0 : i32, i32
  }
  func.func @transform_8(%arg0: i32) -> (i32, i32) {
    %c0_i32 = arith.constant 0 : i32
    %c0_i32_0 = arith.constant 0 : i32
    %c0_i32_1 = arith.constant 0 : i32
    return %c0_i32, %c0_i32_0 : i32, i32
  }
  func.func @transform_9(%arg0: i32) -> (i32, i32) {
    %c0_i32 = arith.constant 0 : i32
    %c0_i32_0 = arith.constant 0 : i32
    %c0_i32_1 = arith.constant 0 : i32
    return %c0_i32, %c0_i32_0 : i32, i32
  }
  func.func @transform_10(%arg0: i32) -> (i32, i32) {
    %c0_i32 = arith.constant 0 : i32
    %c0_i32_0 = arith.constant 0 : i32
    %c0_i32_1 = arith.constant 0 : i32
    return %c0_i32, %c0_i32_0 : i32, i32
  }
  func.func @transform_11(%arg0: i32) -> (i32, i32) {
    %c0_i32 = arith.constant 0 : i32
    %c0_i32_0 = arith.constant 0 : i32
    return %arg0, %c0_i32 : i32, i32
  }
}

</mosaic_0001>

<bundles_post_ra>
// kernel: tpu_custom_call.1
= control target key start
LH: loop header
LB: loop body
LE: loop exit
PB: predicated region body
PF: predicated region fallthrough
CT: control target
= control target key end

     0   :  { %16 = vsyncpa [#allocation3], 0  ;;  %s1424_s0 = inlined_call_operand.hbm [shape: f32[8,128], index: 0, kind: input, shape index: {}]   ;;  %s1425_s1 = inlined_call_operand.hbm [shape: f32[128,128], index: 1, kind: input, shape index: {}]   ;;  %s1426_s2 = inlined_call_operand.vmem [shape: f32[1,128], index: 2, kind: input, shape index: {}]   ;;  %s1427_s3 = inlined_call_operand.hbm [shape: f32[128,128], index: 3, kind: input, shape index: {}]   ;;  %s1428_s4 = inlined_call_operand.vmem [shape: f32[1,128], index: 4, kind: input, shape index: {}]   ;;  %s1429_s5 = inlined_call_operand.hbm [shape: f32[128,128], index: 5, kind: input, shape index: {}]   ;;  %s1430_s6 = inlined_call_operand.vmem [shape: f32[1,128], index: 6, kind: input, shape index: {}]   ;;  %s1431_s7 = inlined_call_operand.hbm [shape: f32[128,128], index: 7, kind: input, shape index: {}]   ;;  %s1432_s8 = inlined_call_operand.vmem [shape: f32[1,128], index: 8, kind: input, shape index: {}]   ;;  %s1433_s9 = inlined_call_operand.hbm [shape: f32[128,128], index: 9, kind: input, shape index: {}]   ;;  %s1434_s10 = inlined_call_operand.vmem [shape: f32[1,128], index: 10, kind: input, shape index: {}]   ;;  %s1435_s11 = inlined_call_operand.hbm [shape: f32[8,128], index: 11, kind: output, shape index: {}]  }
   0x1   :  { %17 = vsyncpa [#allocation6], 0 }
   0x2   :  { %18 = vsyncpa [#allocation9], 0 }
   0x3   :  { %19 = vsyncpa [#allocation12], 0 }
   0x4   :  { %20 = vsyncpa [#allocation4], 0  ;;  %s1183_s17 = smov [#allocation5]   ;;  %s1019_s21 = scalar_lea.hbm %s1425_s1, 2048 }
   0x5   :  { %s36_s18 = sshll.u32 %s1183_s17, 4  ;;  %p1020_p0 = scmp.ne.s32.totalorder %s1425_s1, %s1019_s21  ;;  %s37_s18 = int_to_ptr.vmem [resolvable:$true] %s36_s18 }
   0x6   :  { %p1023_p1 = scmp.lt.u32.totalorder %s1019_s21, %s1425_s1 }
   0x8   :  { %p1025_p2 = pnand %p1023_p1, %p1020_p0 }
   0xa   :  { %1028 = shalt.err (!%p1025_p2)
}
   0xb   :  { %s1029_s26 = scalar_lea.vmem %s37_s18, 2048  ;;  %p1034_p4 = scmp.lt.s32.totalorder %s37_s18, %s37_s18 }
   0xc   :  { %p1030_p3 = scmp.ne.s32.totalorder %s37_s18, %s1029_s26  ;;  %p1035_p5 = scmp.lt.s32.totalorder %s1029_s26, %s1029_s26 }
   0xe   :  { %p1036_p6 = por %p1035_p5, %p1034_p4 }
  0x10   :  { %p1037_p7 = pnand %p1036_p6, %p1030_p3 }
  0x12   :  { %1040 = shalt.err (!%p1037_p7)
}
  0x13   :  { %s1184_s27 = smov 128   ;;  %s1185_s28 = smov 8  }
  0x14   :  { %42 = dma.hbm_to_vmem [thread:$0]  %s1425_s1, 2048, %s37_s18, [#allocation6], %s1184_s27, %s1184_s27, %s1185_s28  }
  0x15   :  { %s1186_s12 = smov [#allocation8]   ;;  %s1187_s14 = smov [#allocation2]  }
  0x16   :  { %s64_s13 = sshll.u32 %s1186_s12, 4  ;;  %s27_s15 = sshll.u32 %s1187_s14, 4  ;;  %s65_s13 = int_to_ptr.vmem [resolvable:$true] %s64_s13  ;;  %s28_s15 = int_to_ptr.vmem [resolvable:$true] %s27_s15 }
  0x17   :  { %s1041_s19 = scalar_lea.hbm %s1429_s5, 2048 }
  0x18   :  { %p1042_p8 = scmp.ne.s32.totalorder %s1429_s5, %s1041_s19  ;;  %p1045_p9 = scmp.lt.u32.totalorder %s1041_s19, %s1429_s5 }
  0x1a   :  { %p1047_p10 = pnand %p1045_p9, %p1042_p8 }
  0x1c   :  { %1050 = shalt.err (!%p1047_p10)
}
  0x1d   :  { %s1051_s1 = scalar_lea.vmem %s65_s13, 2048  ;;  %p1056_p12 = scmp.lt.s32.totalorder %s65_s13, %s65_s13 }
  0x1e   :  { %p1052_p11 = scmp.ne.s32.totalorder %s65_s13, %s1051_s1  ;;  %p1057_p13 = scmp.lt.s32.totalorder %s1051_s1, %s1051_s1 }
  0x20   :  { %p1058_p0 = por %p1057_p13, %p1056_p12 }
  0x22   :  { %p1059_p1 = pnand %p1058_p0, %p1052_p11 }
  0x24   :  { %1062 = shalt.err (!%p1059_p1)
}
  0x25   :  { %70 = dma.hbm_to_vmem [thread:$0]  %s1429_s5, 2048, %s65_s13, [#allocation9], %s1184_s27, %s1184_s27, %s1185_s28  }
  0x26   :  { %s1063_s29 = scalar_lea.hbm %s1424_s0, 128 }
  0x27   :  { %p1064_p2 = scmp.ne.s32.totalorder %s1424_s0, %s1063_s29  ;;  %p1067_p3 = scmp.lt.u32.totalorder %s1063_s29, %s1424_s0 }
  0x29   :  { %p1069_p4 = pnand %p1067_p3, %p1064_p2 }
  0x2b   :  { %1072 = shalt.err (!%p1069_p4)
}
  0x2c   :  { %s1073_s17 = scalar_lea.vmem %s28_s15, 128  ;;  %p1078_p6 = scmp.lt.s32.totalorder %s28_s15, %s28_s15 }
  0x2d   :  { %p1074_p5 = scmp.ne.s32.totalorder %s28_s15, %s1073_s17  ;;  %p1079_p7 = scmp.lt.s32.totalorder %s1073_s17, %s1073_s17 }
  0x2f   :  { %p1080_p8 = por %p1079_p7, %p1078_p6 }
  0x31   :  { %p1081_p9 = pnand %p1080_p8, %p1074_p5 }
  0x33   :  { %1084 = shalt.err (!%p1081_p9)
}
  0x34   :  { %30 = dma.hbm_to_vmem [thread:$0]  %s1424_s0, 128, %s28_s15, [#allocation3]  }
  0x35   :  { %s1188_s19 = smov [#allocation7]   ;;  %s1189_s21 = smov [#allocation10]  }
  0x36   :  { %s50_s20 = sshll.u32 %s1188_s19, 4  ;;  %s78_s22 = sshll.u32 %s1189_s21, 4  ;;  %s51_s20 = int_to_ptr.vmem [resolvable:$true] %s50_s20  ;;  %s79_s22 = int_to_ptr.vmem [resolvable:$true] %s78_s22 }
  0x37   :  { %s1085_s18 = scalar_lea.hbm %s1427_s3, 2048 }
  0x38   :  { %p1086_p10 = scmp.ne.s32.totalorder %s1427_s3, %s1085_s18  ;;  %p1089_p11 = scmp.lt.u32.totalorder %s1085_s18, %s1427_s3 }
  0x3a   :  { %p1091_p12 = pnand %p1089_p11, %p1086_p10 }
  0x3c   :  { %1094 = shalt.err (!%p1091_p12)
}
  0x3d   :  { %s1095_s0 = scalar_lea.vmem %s51_s20, 2048  ;;  %p1100_p0 = scmp.lt.s32.totalorder %s51_s20, %s51_s20 }
  0x3e   :  { %p1096_p13 = scmp.ne.s32.totalorder %s51_s20, %s1095_s0  ;;  %p1101_p1 = scmp.lt.s32.totalorder %s1095_s0, %s1095_s0 }
  0x40   :  { %p1102_p2 = por %p1101_p1, %p1100_p0 }
  0x42   :  { %p1103_p3 = pnand %p1102_p2, %p1096_p13 }
  0x44   :  { %1106 = shalt.err (!%p1103_p3)
}
  0x45   :  { %56 = dma.hbm_to_vmem [thread:$0]  %s1427_s3, 2048, %s51_s20, [#allocation6], %s1184_s27, %s1184_s27, %s1185_s28  }
  0x46   :  { %s1107_s16 = scalar_lea.hbm %s1431_s7, 2048 }
  0x47   :  { %p1108_p4 = scmp.ne.s32.totalorder %s1431_s7, %s1107_s16  ;;  %p1111_p5 = scmp.lt.u32.totalorder %s1107_s16, %s1431_s7 }
  0x49   :  { %p1113_p6 = pnand %p1111_p5, %p1108_p4 }
  0x4b   :  { %1116 = shalt.err (!%p1113_p6)
}
  0x4c   :  { %s1117_s21 = scalar_lea.vmem %s79_s22, 2048  ;;  %p1122_p8 = scmp.lt.s32.totalorder %s79_s22, %s79_s22 }
  0x4d   :  { %p1118_p7 = scmp.ne.s32.totalorder %s79_s22, %s1117_s21  ;;  %p1123_p9 = scmp.lt.s32.totalorder %s1117_s21, %s1117_s21 }
  0x4f   :  { %p1124_p10 = por %p1123_p9, %p1122_p8 }
  0x51   :  { %p1125_p11 = pnand %p1124_p10, %p1118_p7 }
  0x53   :  { %1128 = shalt.err (!%p1125_p11)
}
  0x54   :  { %84 = dma.hbm_to_vmem [thread:$0]  %s1431_s7, 2048, %s79_s22, [#allocation9], %s1184_s27, %s1184_s27, %s1185_s28  }
  0x55   :  { %s1190_s23 = smov [#allocation11]   ;;  %s1129_s25 = scalar_lea.hbm %s1433_s9, 2048 }
  0x56   :  { %s92_s1 = sshll.u32 %s1190_s23, 4  ;;  %p1130_p12 = scmp.ne.s32.totalorder %s1433_s9, %s1129_s25  ;;  %s93_s1 = int_to_ptr.vmem [resolvable:$true] %s92_s1 }
  0x57   :  { %p1133_p13 = scmp.lt.u32.totalorder %s1129_s25, %s1433_s9 }
  0x59   :  { %p1135_p0 = pnand %p1133_p13, %p1130_p12 }
  0x5b   :  { %1138 = shalt.err (!%p1135_p0)
}
  0x5c   :  { %s1139_s30 = scalar_lea.vmem %s93_s1, 2048  ;;  %p1144_p2 = scmp.lt.s32.totalorder %s93_s1, %s93_s1 }
  0x5d   :  { %p1140_p1 = scmp.ne.s32.totalorder %s93_s1, %s1139_s30  ;;  %p1145_p3 = scmp.lt.s32.totalorder %s1139_s30, %s1139_s30 }
  0x5f   :  { %p1146_p4 = por %p1145_p3, %p1144_p2 }
  0x61   :  { %p1147_p5 = pnand %p1146_p4, %p1140_p1 }
  0x63   :  { %1150 = shalt.err (!%p1147_p5)
}
  0x64   :  { %98 = dma.hbm_to_vmem [thread:$0]  %s1433_s9, 2048, %s93_s1, [#allocation12], %s1184_s27, %s1184_s27, %s1185_s28  }
  0x65   :  { %1173 = dma.done.wait [#allocation3], 128  }
  0x66   :  { %1174 = vsyncadd [#allocation3], 4294967168 }
  0x67   :  { %1175 = dma.done.wait [#allocation6], 4096  }
  0x68   :  { %1176 = vsyncadd [#allocation6], 4294963200 }
  0x69   :  { %1177 = dma.done.wait [#allocation9], 4096  }
  0x6a   :  { %1178 = vsyncadd [#allocation9], 4294963200 }
  0x6b   :  { %1179 = dma.done.wait [#allocation12], 2048  }
  0x6c   :  { %1180 = vsyncadd [#allocation12], 4294965248  ;;  %v1191_v0 = vmov 0.0|0.0   ;;  %v1344_v1 = vld [vmem:[#allocation2] sm:$0xff]  ;;  %v127_v2 = vld [vmem:[#allocation5] sm:$0xff]  ;;  %vm1192_vm0 = vmmov 0  }
  0x6d   :  { %885 = vmatprep.subr.bf16.mxu0 %v1191_v0  ;;  %909 = vmatprep.subr.bf16.mxu1 %v1191_v0  ;;  %v128_v3 = vld [vmem:[#allocation5 + $0x8] sm:$0xff]  ;;  %v120_v4 = vmul.f32 %v1344_v1, %v1344_v1  ;;  %v129_v6 = vld [vmem:[#allocation5 + $0x10] sm:$0xff]  ;;  %v130_v7 = vld [vmem:[#allocation5 + $0x18] sm:$0xff]  ;;  %v1193_v23 = vmov 0.0   ;;  %s1194_s5 = smov [#allocation13]  }
  0x6e   :  { %v886_v5 = vpack.c.bf16 %v128_v3, %v127_v2  ;;  %v889_v8 = vpack.c.bf16 %v130_v7, %v129_v6  ;;  %v131_v9 = vld [vmem:[#allocation5 + $0x20] sm:$0xff]  ;;  %v132_v10 = vld [vmem:[#allocation5 + $0x28] sm:$0xff]  ;;  %v133_v12 = vld [vmem:[#allocation5 + $0x30] sm:$0xff]  ;;  %742 = vmatprep.mubr.msk.f32.mxu0 %vm1192_vm0, %v1193_v23  ;;  %777 = vmatprep.mubr.msk.f32.mxu1 %vm1192_vm0, %v1193_v23  ;;  %s608_s13 = sshll.u32 %s1194_s5, 4  ;;  %s609_s13 = int_to_ptr.vmem [resolvable:$true] %s608_s13 }
  0x6f   :  { %121 = vadd.xlane.f32.xlu0 %v120_v4  ;;  %v892_v11 = vpack.c.bf16 %v132_v10, %v131_v9  ;;  %v134_v13 = vld [vmem:[#allocation5 + $0x38] sm:$0xff]  ;;  %v135_v15 = vld [vmem:[#allocation5 + $0x40] sm:$0xff]  ;;  %v136_v16 = vld [vmem:[#allocation5 + $0x48] sm:$0xff]  ;;  %s1151_s19 = scalar_lea.vmem %s609_s13, 128  ;;  %p1156_p7 = scmp.lt.s32.totalorder %s609_s13, %s609_s13 }
  0x70   :  { %887 = vmatpush3.bf16.msra.mxu0 %v886_v5  ;;  %v895_v14 = vpack.c.bf16 %v134_v13, %v133_v12  ;;  %v898_v17 = vpack.c.bf16 %v136_v16, %v135_v15  ;;  %v137_v18 = vld [vmem:[#allocation5 + $0x50] sm:$0xff]  ;;  %v138_v19 = vld [vmem:[#allocation5 + $0x58] sm:$0xff]  ;;  %v139_v21 = vld [vmem:[#allocation5 + $0x60] sm:$0xff]  ;;  %p1152_p6 = scmp.ne.s32.totalorder %s609_s13, %s1151_s19  ;;  %p1157_p8 = scmp.lt.s32.totalorder %s1151_s19, %s1151_s19 }
  0x71   :  { %888 = vmatprep.subr.bf16.mxu0 %v1191_v0  ;;  %v901_v20 = vpack.c.bf16 %v138_v19, %v137_v18  ;;  %v140_v22 = vld [vmem:[#allocation5 + $0x68] sm:$0xff]  ;;  %v141_v25 = vld [vmem:[#allocation5 + $0x70] sm:$0xff]  ;;  %v142_v26 = vld [vmem:[#allocation5 + $0x78] sm:$0xff] }
  0x72   :  { %v904_v24 = vpack.c.bf16 %v140_v22, %v139_v21  ;;  %v907_v27 = vpack.c.bf16 %v142_v26, %v141_v25  ;;  %v223_v28 = vld [vmem:[#allocation7] sm:$0xff]  ;;  %v224_v29 = vld [vmem:[#allocation7 + $0x8] sm:$0xff]  ;;  %v225_v30 = vld [vmem:[#allocation7 + $0x10] sm:$0xff]  ;;  %p1158_p9 = por %p1157_p8, %p1156_p7 }
  0x73   :  { %v910_v31 = vpack.c.bf16 %v224_v29, %v223_v28  ;;  %v226_v32 = vld [vmem:[#allocation7 + $0x18] sm:$0xff]  ;;  %v227_v34 = vld [vmem:[#allocation7 + $0x20] sm:$0xff]  ;;  %v228_v35 = vld [vmem:[#allocation7 + $0x28] sm:$0xff] }
  0x74   :  { %890 = vmatpush3.bf16.msra.mxu0 %v889_v8  ;;  %v913_v33 = vpack.c.bf16 %v226_v32, %v225_v30  ;;  %v916_v36 = vpack.c.bf16 %v228_v35, %v227_v34  ;;  %v229_v37 = vld [vmem:[#allocation7 + $0x30] sm:$0xff]  ;;  %v230_v38 = vld [vmem:[#allocation7 + $0x38] sm:$0xff]  ;;  %v231_v40 = vld [vmem:[#allocation7 + $0x40] sm:$0xff]  ;;  %p1159_p10 = pnand %p1158_p9, %p1152_p6 }
  0x75   :  { %891 = vmatprep.subr.bf16.mxu0 %v1191_v0  ;;  %911 = vmatpush3.bf16.msra.mxu1 %v910_v31  ;;  %v919_v39 = vpack.c.bf16 %v230_v38, %v229_v37  ;;  %v232_v41 = vld [vmem:[#allocation7 + $0x48] sm:$0xff]  ;;  %v233_v43 = vld [vmem:[#allocation7 + $0x50] sm:$0xff]  ;;  %v234_v44 = vld [vmem:[#allocation7 + $0x58] sm:$0xff] }
  0x76   :  { %912 = vmatprep.subr.bf16.mxu1 %v1191_v0  ;;  %v922_v42 = vpack.c.bf16 %v232_v41, %v231_v40  ;;  %v925_v45 = vpack.c.bf16 %v234_v44, %v233_v43  ;;  %v235_v46 = vld [vmem:[#allocation7 + $0x60] sm:$0xff]  ;;  %v236_v47 = vld [vmem:[#allocation7 + $0x68] sm:$0xff]  ;;  %v237_v54 = vld [vmem:[#allocation7 + $0x70] sm:$0xff] }
  0x77   :  { %v928_v48 = vpack.c.bf16 %v236_v47, %v235_v46  ;;  %v238_v55 = vld [vmem:[#allocation7 + $0x78] sm:$0xff]  ;;  %v319_v57 = vld [vmem:[#allocation8] sm:$0xff]  ;;  %v320_v58 = vld [vmem:[#allocation8 + $0x8] sm:$0xff] }
  0x78   :  { %893 = vmatpush3.bf16.msra.mxu0 %v892_v11  ;;  %v931_v56 = vpack.c.bf16 %v238_v55, %v237_v54  ;;  %v321_v59 = vld [vmem:[#allocation8 + $0x10] sm:$0xff]  ;;  %v934_v60 = vpack.c.bf16 %v320_v58, %v319_v57  ;;  %v322_v61 = vld [vmem:[#allocation8 + $0x18] sm:$0xff]  ;;  %v323_v63 = vld [vmem:[#allocation8 + $0x20] sm:$0xff] }
  0x79   :  { %894 = vmatprep.subr.bf16.mxu0 %v1191_v0  ;;  %914 = vmatpush3.bf16.msra.mxu1 %v913_v33  ;;  %v937_v62 = vpack.c.bf16 %v322_v61, %v321_v59  ;;  %v325_v3 = vld [vmem:[#allocation8 + $0x30] sm:$0xff]  ;;  %v326_v4 = vld [vmem:[#allocation8 + $0x38] sm:$0xff]  ;;  %v327_v6 = vld [vmem:[#allocation8 + $0x40] sm:$0xff] }
  0x7a   :  { %915 = vmatprep.subr.bf16.mxu1 %v1191_v0  ;;  %v943_v5 = vpack.c.bf16 %v326_v4, %v325_v3  ;;  %v328_v7 = vld [vmem:[#allocation8 + $0x48] sm:$0xff]  ;;  %v329_v9 = vld [vmem:[#allocation8 + $0x50] sm:$0xff]  ;;  %v330_v10 = vld [vmem:[#allocation8 + $0x58] sm:$0xff] }
  0x7b   :  { %v946_v8 = vpack.c.bf16 %v328_v7, %v327_v6  ;;  %v949_v11 = vpack.c.bf16 %v330_v10, %v329_v9  ;;  %v331_v12 = vld [vmem:[#allocation8 + $0x60] sm:$0xff]  ;;  %v332_v13 = vld [vmem:[#allocation8 + $0x68] sm:$0xff]  ;;  %v620_v15 = vld [vmem:[%s1426_s2] ss:$0 sm:$0xff] }
  0x7c   :  { %896 = vmatpush3.bf16.msra.mxu0 %v895_v14  ;;  %v952_v14 = vpack.c.bf16 %v332_v13, %v331_v12  ;;  %v333_v21 = vld [vmem:[#allocation8 + $0x70] sm:$0xff]  ;;  %v334_v22 = vld [vmem:[#allocation8 + $0x78] sm:$0xff]  ;;  %v412_v25 = vld [vmem:[#allocation10] sm:$0xff] }
  0x7d   :  { %897 = vmatprep.subr.bf16.mxu0 %v1191_v0  ;;  %917 = vmatpush3.bf16.msra.mxu1 %v916_v36  ;;  %v413_v26 = vld [vmem:[#allocation10 + $0x8] sm:$0xff]  ;;  %v415_v29 = vld [vmem:[#allocation10 + $0x18] sm:$0xff]  ;;  %v416_v31 = vld [vmem:[#allocation10 + $0x20] sm:$0xff] }
  0x7e   :  { %918 = vmatprep.subr.bf16.mxu1 %v1191_v0  ;;  %v958_v28 = vpack.c.bf16 %v413_v26, %v412_v25  ;;  %v417_v32 = vld [vmem:[#allocation10 + $0x28] sm:$0xff]  ;;  %v418_v34 = vld [vmem:[#allocation10 + $0x30] sm:$0xff]  ;;  %v419_v35 = vld [vmem:[#allocation10 + $0x38] sm:$0xff] }
  0x7f   :  { %v964_v33 = vpack.c.bf16 %v417_v32, %v416_v31  ;;  %v967_v36 = vpack.c.bf16 %v419_v35, %v418_v34  ;;  %v420_v37 = vld [vmem:[#allocation10 + $0x40] sm:$0xff]  ;;  %v421_v38 = vld [vmem:[#allocation10 + $0x48] sm:$0xff]  ;;  %v422_v40 = vld [vmem:[#allocation10 + $0x50] sm:$0xff] }
  0x80   :  { %899 = vmatpush3.bf16.msra.mxu0 %v898_v17  ;;  %v423_v41 = vld [vmem:[#allocation10 + $0x58] sm:$0xff]  ;;  %v424_v43 = vld [vmem:[#allocation10 + $0x60] sm:$0xff]  ;;  %v425_v44 = vld [vmem:[#allocation10 + $0x68] sm:$0xff] }
  0x81   :  { %900 = vmatprep.subr.bf16.mxu0 %v1191_v0  ;;  %920 = vmatpush3.bf16.msra.mxu1 %v919_v39  ;;  %v970_v39 = vpack.c.bf16 %v421_v38, %v420_v37  ;;  %v621_v46 = vld [vmem:[%s1428_s4] ss:$0 sm:$0xff]  ;;  %v508_v55 = vld [vmem:[#allocation11] sm:$0xff]  ;;  %v510_v57 = vld [vmem:[#allocation11 + $0x10] sm:$0xff] }
  0x82   :  { %921 = vmatprep.subr.bf16.mxu1 %v1191_v0  ;;  %v511_v59 = vld [vmem:[#allocation11 + $0x18] sm:$0xff]  ;;  %v512_v61 = vld [vmem:[#allocation11 + $0x20] sm:$0xff]  ;;  %v517_v4 = vld [vmem:[#allocation11 + $0x48] sm:$0xff] }
  0x83   :  { %v516_v3 = vld [vmem:[#allocation11 + $0x40] sm:$0xff]  ;;  %v518_v6 = vld [vmem:[#allocation11 + $0x50] sm:$0xff]  ;;  %v519_v7 = vld [vmem:[#allocation11 + $0x58] sm:$0xff] }
  0x84   :  { %902 = vmatpush3.bf16.msra.mxu0 %v901_v20  ;;  %v520_v9 = vld [vmem:[#allocation11 + $0x60] sm:$0xff]  ;;  %v521_v10 = vld [vmem:[#allocation11 + $0x68] sm:$0xff]  ;;  %v622_v12 = vld [vmem:[%s1430_s6] ss:$0 sm:$0xff] }
  0x85   :  { %903 = vmatprep.subr.bf16.mxu0 %v1191_v0  ;;  %923 = vmatpush3.bf16.msra.mxu1 %v922_v42  ;;  %v973_v42 = vpack.c.bf16 %v423_v41, %v422_v40  ;;  %v624_v25 = vld [vmem:[%s1434_s10] ss:$0 sm:$0xff] }
  0x86   :  { %924 = vmatprep.subr.bf16.mxu1 %v1191_v0 }
  0x88   :  { %905 = vmatpush3.bf16.msra.mxu0 %v904_v24  ;;  %v955_v24 = vpack.c.bf16 %v334_v22, %v333_v21 }
  0x89   :  { %906 = vmatprep.subr.bf16.mxu0 %v1191_v0  ;;  %926 = vmatpush3.bf16.msra.mxu1 %v925_v45  ;;  %v976_v45 = vpack.c.bf16 %v425_v44, %v424_v43 }
  0x8a   :  { %927 = vmatprep.subr.bf16.mxu1 %v1191_v0 }
  0x8c   :  { %908 = vmatpush3.bf16.msra.mxu0 %v907_v27  ;;  %v414_v27 = vld [vmem:[#allocation10 + $0x10] sm:$0xff] }
  0x8d   :  { %933 = vmatprep.subr.bf16.mxu0 %v1191_v0  ;;  %929 = vmatpush3.bf16.msra.mxu1 %v928_v48  ;;  %v961_v30 = vpack.c.bf16 %v415_v29, %v414_v27 }
  0x8e   :  { %930 = vmatprep.subr.bf16.mxu1 %v1191_v0 }
  0x91   :  { %932 = vmatpush3.bf16.msra.mxu1 %v931_v56  ;;  %v509_v56 = vld [vmem:[#allocation11 + $0x8] sm:$0xff] }
  0x92   :  { %957 = vmatprep.subr.bf16.mxu1 %v1191_v0  ;;  %v982_v58 = vpack.c.bf16 %v509_v56, %v508_v55 }
  0xfc   :  { %v122_v49 = vpop.xlane.xlu0 %121 }
  0xfd   :  { %v123_v50 = vmul.f32 0.03125, %v122_v49 }
  0xff   :  { %v124_v51 = vadd.f32 1e-08, %v123_v50 }
 0x101   :  { %1017 = vrsqrt.f32 %v124_v51 }
 0x10b   :  { %v1018_v52 = vpop.eup %1017 }
 0x10c   :  { %v126_v53 = vmul.f32 %v1018_v52, %v1344_v1  ;;  %v324_v1 = vld [vmem:[#allocation8 + $0x28] sm:$0xff]  ;;  %v426_v52 = vld [vmem:[#allocation10 + $0x70] sm:$0xff] }
 0x10d   :  { %v940_v2 = vpack.c.bf16 %v324_v1, %v323_v63  ;;  %v515_v1 = vld [vmem:[#allocation11 + $0x38] sm:$0xff] }
 0x10e   :  { %743 = vmatmul.mubr.f32.vlgmr.msra.gmra.mrb[0].mxu0 %v126_v53  ;;  %v427_v53 = vld [vmem:[#allocation10 + $0x78] sm:$0xff] }
 0x10f   :  { %812 = vmatprep.mubr.msk.f32.mxu0 %vm1192_vm0, %v1193_v23  ;;  %935 = vmatpush3.bf16.msra.mxu0 %v934_v60  ;;  %v979_v54 = vpack.c.bf16 %v427_v53, %v426_v52  ;;  %v985_v60 = vpack.c.bf16 %v511_v59, %v510_v57 }
 0x110   :  { %936 = vmatprep.subr.bf16.mxu0 %v1191_v0 }
 0x113   :  { %938 = vmatpush3.bf16.msra.mxu0 %v937_v62  ;;  %v513_v62 = vld [vmem:[#allocation11 + $0x28] sm:$0xff] }
 0x114   :  { %939 = vmatprep.subr.bf16.mxu0 %v1191_v0  ;;  %v988_v63 = vpack.c.bf16 %v513_v62, %v512_v61 }
 0x117   :  { %941 = vmatpush3.bf16.msra.mxu0 %v940_v2 }
 0x118   :  { %942 = vmatprep.subr.bf16.mxu0 %v1191_v0 }
 0x11b   :  { %944 = vmatpush3.bf16.msra.mxu0 %v943_v5  ;;  %v994_v5 = vpack.c.bf16 %v517_v4, %v516_v3 }
 0x11c   :  { %945 = vmatprep.subr.bf16.mxu0 %v1191_v0 }
 0x11f   :  { %947 = vmatpush3.bf16.msra.mxu0 %v946_v8  ;;  %v997_v8 = vpack.c.bf16 %v519_v7, %v518_v6 }
 0x120   :  { %948 = vmatprep.subr.bf16.mxu0 %v1191_v0 }
 0x123   :  { %950 = vmatpush3.bf16.msra.mxu0 %v949_v11  ;;  %v1000_v11 = vpack.c.bf16 %v521_v10, %v520_v9 }
 0x124   :  { %951 = vmatprep.subr.bf16.mxu0 %v1191_v0 }
 0x127   :  { %953 = vmatpush3.bf16.msra.mxu0 %v952_v14 }
 0x128   :  { %954 = vmatprep.subr.bf16.mxu0 %v1191_v0 }
 0x12b   :  { %956 = vmatpush3.bf16.msra.mxu0 %v955_v24 }
 0x12c   :  { %981 = vmatprep.subr.bf16.mxu0 %v1191_v0 }
 0x1e1   :  { %v216_v16 = vpop.f32.mrb[0].mxu0 }
 0x1e2   :  { %v217_v17 = vadd.f32 %v620_v15, %v216_v16  ;;  %v744_v18 = vpop.f32.mrb[1].mxu0  ;;  %v522_v16 = vld [vmem:[#allocation11 + $0x70] sm:$0xff] }
 0x1e4   :  { %v221_v19 = vmul.f32 0.2, %v217_v17  ;;  %vm220_vm1 = vcmp.ge.f32.partialorder %v217_v17, 0.0 }
 0x1e6   :  { %v222_v20 = vsel %vm220_vm1, %v217_v17, %v221_v19  ;;  %v523_v17 = vld [vmem:[#allocation11 + $0x78] sm:$0xff] }
 0x1e7   :  { %778 = vmatmul.mubr.f32.vlgmr.msra.gmra.mrb[0].mxu1 %v222_v20  ;;  %v1003_v18 = vpack.c.bf16 %v523_v17, %v522_v16  ;;  %v623_v19 = vld [vmem:[%s1432_s8] ss:$0 sm:$0xff] }
 0x1e8   :  { %847 = vmatprep.mubr.msk.f32.mxu1 %vm1192_vm0, %v1193_v23  ;;  %959 = vmatpush3.bf16.msra.mxu1 %v958_v28 }
 0x1e9   :  { %960 = vmatprep.subr.bf16.mxu1 %v1191_v0 }
 0x1ec   :  { %962 = vmatpush3.bf16.msra.mxu1 %v961_v30 }
 0x1ed   :  { %963 = vmatprep.subr.bf16.mxu1 %v1191_v0 }
 0x1f0   :  { %965 = vmatpush3.bf16.msra.mxu1 %v964_v33 }
 0x1f1   :  { %966 = vmatprep.subr.bf16.mxu1 %v1191_v0 }
 0x1f4   :  { %968 = vmatpush3.bf16.msra.mxu1 %v967_v36 }
 0x1f5   :  { %969 = vmatprep.subr.bf16.mxu1 %v1191_v0 }
 0x1f8   :  { %971 = vmatpush3.bf16.msra.mxu1 %v970_v39 }
 0x1f9   :  { %972 = vmatprep.subr.bf16.mxu1 %v1191_v0 }
 0x1fc   :  { %974 = vmatpush3.bf16.msra.mxu1 %v973_v42 }
 0x1fd   :  { %975 = vmatprep.subr.bf16.mxu1 %v1191_v0 }
 0x200   :  { %977 = vmatpush3.bf16.msra.mxu1 %v976_v45 }
 0x201   :  { %978 = vmatprep.subr.bf16.mxu1 %v1191_v0 }
 0x204   :  { %980 = vmatpush3.bf16.msra.mxu1 %v979_v54 }
 0x2ba   :  { %v312_v47 = vpop.f32.mrb[0].mxu1 }
 0x2bb   :  { %v313_v48 = vadd.f32 %v621_v46, %v312_v47  ;;  %v779_v49 = vpop.f32.mrb[1].mxu1 }
 0x2bd   :  { %vm316_vm2 = vcmp.ge.f32.partialorder %v313_v48, 0.0  ;;  %v317_v50 = vmul.f32 0.2, %v313_v48 }
 0x2bf   :  { %v318_v51 = vsel %vm316_vm2, %v313_v48, %v317_v50 }
 0x2c0   :  { %813 = vmatmul.mubr.f32.vlgmr.msra.gmra.mrb[2].mxu0 %v318_v51 }
 0x2c1   :  { %882 = vmatprep.mubr.msk.f32.mxu0 %vm1192_vm0, %v1193_v23  ;;  %983 = vmatpush3.bf16.msra.mxu0 %v982_v58  ;;  %v514_v23 = vld [vmem:[#allocation11 + $0x30] sm:$0xff] }
 0x2c2   :  { %984 = vmatprep.subr.bf16.mxu0 %v1191_v0  ;;  %v991_v2 = vpack.c.bf16 %v515_v1, %v514_v23 }
 0x2c5   :  { %986 = vmatpush3.bf16.msra.mxu0 %v985_v60 }
 0x2c6   :  { %987 = vmatprep.subr.bf16.mxu0 %v1191_v0 }
 0x2c9   :  { %989 = vmatpush3.bf16.msra.mxu0 %v988_v63 }
 0x2ca   :  { %990 = vmatprep.subr.bf16.mxu0 %v1191_v0 }
 0x2cd   :  { %992 = vmatpush3.bf16.msra.mxu0 %v991_v2 }
 0x2ce   :  { %993 = vmatprep.subr.bf16.mxu0 %v1191_v0 }
 0x2d1   :  { %995 = vmatpush3.bf16.msra.mxu0 %v994_v5 }
 0x2d2   :  { %996 = vmatprep.subr.bf16.mxu0 %v1191_v0 }
 0x2d5   :  { %998 = vmatpush3.bf16.msra.mxu0 %v997_v8 }
 0x2d6   :  { %999 = vmatprep.subr.bf16.mxu0 %v1191_v0 }
 0x2d9   :  { %1001 = vmatpush3.bf16.msra.mxu0 %v1000_v11 }
 0x2da   :  { %1002 = vmatprep.subr.bf16.mxu0 %v1191_v0 }
 0x2dd   :  { %1004 = vmatpush3.bf16.msra.mxu0 %v1003_v18 }
 0x393   :  { %v408_v13 = vpop.f32.mrb[2].mxu0 }
 0x394   :  { %v409_v14 = vadd.f32 %v622_v12, %v408_v13  ;;  %v814_v15 = vpop.f32.mrb[3].mxu0 }
 0x396   :  { %848 = vmatmul.mubr.f32.vlgmr.msra.gmra.mrb[2].mxu1 %v409_v14 }
 0x469   :  { %v501_v20 = vpop.f32.mrb[2].mxu1 }
 0x46a   :  { %v502_v21 = vadd.f32 %v623_v19, %v501_v20  ;;  %v849_v22 = vpop.f32.mrb[3].mxu1 }
 0x46c   :  { %vm505_vm3 = vcmp.ge.f32.partialorder %v502_v21, 0.0  ;;  %v506_v0 = vmul.f32 0.2, %v502_v21 }
 0x46e   :  { %v507_v24 = vsel %vm505_vm3, %v502_v21, %v506_v0 }
 0x46f   :  { %883 = vmatmul.mubr.f32.vlgmr.msra.gmra.mrb[4].mxu0 %v507_v24 }
 0x542   :  { %v597_v26 = vpop.f32.mrb[4].mxu0 }
 0x543   :  { %v598_v27 = vadd.f32 %v624_v25, %v597_v26  ;;  %v884_v28 = vpop.f32.mrb[5].mxu0 }
 0x545   :  { %601 = vst [vmem:[#allocation13] sm:$0xff] %v598_v27 }
 0x546   :  { %1162 = shalt.err (!%p1159_p10)
}
 0x547   :  { %s1163_s3 = scalar_lea.hbm %s1435_s11, 128 }
 0x548   :  { %p1164_p11 = scmp.ne.s32.totalorder %s1435_s11, %s1163_s3  ;;  %p1167_p12 = scmp.lt.u32.totalorder %s1163_s3, %s1435_s11 }
 0x54a   :  { %p1169_p13 = pnand %p1167_p12, %p1164_p11 }
 0x54c   :  { %1172 = shalt.err (!%p1169_p13)
}
 0x54d   :  { %611 = dma.vmem_to_hbm [thread:$0]  %s609_s13, 128, %s1435_s11, [#allocation4]  }
 0x54e   :  { %1181 = dma.done.wait [#allocation4], 128  }
 0x54f   :  { %1182 = vsyncadd [#allocation4], 4294967168 }
 0x550   :  { %615 = vsyncpa [#allocation3], 1 }
 0x551   :  { %616 = vsyncpa [#allocation6], 1 }
 0x552   :  { %617 = vsyncpa [#allocation9], 1 }
 0x553   :  { %618 = vsyncpa [#allocation12], 1 }
 0x554   :  { %619 = vsyncpa [#allocation4], 1 }

</bundles_post_ra>
